<compile_context>
chip_gen: v5e
topology: v5e:2x2
jax: 0.10.0
libtpu: 0.0.40
codegen_flags: <defaults>
</compile_context>

<pallas_src>
import numpy as np
import jax
import jax.numpy as jnp
from jax.experimental import pallas as pl
from jax.experimental.pallas import tpu as pltpu


def conv_block_kernel(x_ref, w_ref, b_ref, o_ref, buf_a, buf_b):
    """Fused multi-layer 3x3 conv + bias + ReLU for one batch element.

    x_ref : (1, H, W*Cbuf) bf16      input rows, channels interleaved per pixel
    w_ref : (L*3, W*Cbuf, W*Cbuf) bf16  banded weights, one matrix per (layer, kh)
    b_ref : (L, W*Cbuf) f32          bias replicated along W
    o_ref : (1, H, W*Cbuf) f32       output rows (lane-dense store)
    buf_a, buf_b : (H+2, W*Cbuf) bf16  ping-pong activation buffers with a 2-row halo
    """
    H, WC = o_ref.shape[1], o_ref.shape[2]
    L = b_ref.shape[0]

    # Keep the top/bottom halo rows of BOTH buffers zero.  Interior rows are fully
    # rewritten every layer, so this is the only zeroing needed (4 x (1, WC) stores).
    zero_row = jnp.zeros((1, WC), jnp.bfloat16)
    buf_a[0:1, :] = zero_row
    buf_a[H + 1:H + 2, :] = zero_row
    buf_b[0:1, :] = zero_row
    buf_b[H + 1:H + 2, :] = zero_row

    buf_a[1:H + 1, :] = x_ref[0]

    bufs = (buf_a, buf_b)
    for l in range(L):                       # static unroll over layers
        src = bufs[l % 2]
        # vreg-resident f32 accumulator; 3 MXU matmuls per layer (one per kh).
        acc = jnp.zeros((H, WC), jnp.float32)
        for kh in range(3):                  # row slice = cheap sublane-offset view
            acc += jnp.dot(src[kh:kh + H, :], w_ref[l * 3 + kh],
                           preferred_element_type=jnp.float32)
        act = jnp.maximum(acc + b_ref[l:l + 1, :], 0.0)   # bias + ReLU in f32 (VPU)
        if l == L - 1:
            o_ref[0] = act.astype(o_ref.dtype)            # lane-dense unmasked store
        else:
            bufs[(l + 1) % 2][1:H + 1, :] = act.astype(jnp.bfloat16)


def _build_banded_params(params, W, Cbuf, Cout):
    """Re-express each 3x3 conv as 3 banded (W*Cbuf, W*Cbuf) matrices (one per kh).

    Wband[l, kh, w_in*Cbuf + ci, w_out*Cbuf + co] = w_hwio[kh, w_in - w_out + 1, ci, co]
    whenever the kw tap (w_in - w_out + 1) is in {0,1,2} and w_in lies inside the image.
    Out-of-image taps have no band entry, which implements 'same' zero padding along W.
    """
    L = len(params)
    WC = W * Cbuf
    w_stack = np.zeros((L, 3, WC, WC), np.float32)
    b_stack = np.zeros((L, WC), np.float32)
    for l, (w_hwio, b) in enumerate(params):
        w_np = np.asarray(w_hwio)            # (3, 3, cin_l, Cout)
        b_np = np.asarray(b)                 # (Cout,)
        cin_l = w_np.shape[2]
        for kh in range(3):
            for kw in range(3):
                for w_out in range(W):
                    w_in = w_out + kw - 1
                    if 0 <= w_in < W:
                        w_stack[l, kh,
                                w_in * Cbuf:w_in * Cbuf + cin_l,
                                w_out * Cbuf:w_out * Cbuf + Cout] = w_np[kh, kw]
        b_row = np.zeros((Cbuf,), np.float32)
        b_row[:Cout] = b_np
        b_stack[l] = np.tile(b_row, W)
    w_stack = jnp.asarray(w_stack.reshape(L * 3, WC, WC), dtype=jnp.bfloat16)
    b_stack = jnp.asarray(b_stack)
    return w_stack, b_stack


def conv_block_forward(x_nchw, params):
    """Full ConvBlock forward. Input/output NCHW to match PyTorch semantics."""
    N, Cin, H, W = x_nchw.shape
    L = len(params)
    Cout = params[0][0].shape[-1]
    Cbuf = max(Cin, Cout)                    # per-pixel channel slot count (NOT 128)
    WC = W * Cbuf

    # NCHW -> NHWC, pad channels only Cin -> Cbuf, interleave (W, Cbuf) -> WC lanes,
    # ship as bf16 (MXU input dtype) to halve input HBM traffic.
    x = jnp.transpose(x_nchw, (0, 2, 3, 1))
    if Cbuf > Cin:
        x = jnp.pad(x, ((0, 0), (0, 0), (0, 0), (0, Cbuf - Cin)))
    x = x.reshape(N, H, WC).astype(jnp.bfloat16)

    w_stack, b_stack = _build_banded_params(params, W, Cbuf, Cout)

    out = pl.pallas_call(
        conv_block_kernel,
        out_shape=jax.ShapeDtypeStruct((N, H, WC), jnp.float32),
        grid_spec=pltpu.PrefetchScalarGridSpec(
            num_scalar_prefetch=0,
            grid=(N,),
            in_specs=[
                pl.BlockSpec((1, H, WC), lambda n: (n, 0, 0)),
                pl.BlockSpec((L * 3, WC, WC), lambda n: (0, 0, 0)),
                pl.BlockSpec((L, WC), lambda n: (0, 0)),
            ],
            out_specs=pl.BlockSpec((1, H, WC), lambda n: (n, 0, 0)),
            scratch_shapes=[
                pltpu.VMEM((H + 2, WC), jnp.bfloat16),   # ping
                pltpu.VMEM((H + 2, WC), jnp.bfloat16),   # pong
            ],
        ),
        compiler_params=pltpu.CompilerParams(
            dimension_semantics=("parallel",)),
    )(x, w_stack, b_stack)

    # (N, H, W*Cbuf) -> (N, H, W, Cbuf) -> drop padded channels -> NCHW.
    out = out.reshape(N, H, W, Cbuf)[..., :Cout]
    return jnp.transpose(out, (0, 3, 1, 2))


def make_conv_block_params(key, in_channels, out_channels, conv_num):
    """Deterministic synthetic parameters matching nn.Conv2d shapes."""
    params = []
    cin = in_channels
    for _ in range(conv_num):
        key, kw, kb = jax.random.split(key, 3)
        # PyTorch weight layout (Cout, Cin, 3, 3); store as (3, 3, Cin, Cout).
        w_oihw = jax.random.normal(kw, (out_channels, cin, 3, 3), jnp.float32) * 0.1
        b = jax.random.normal(kb, (out_channels,), jnp.float32) * 0.1
        w_hwio = jnp.transpose(w_oihw, (2, 3, 1, 0))
        params.append((w_hwio, b))
        cin = out_channels
    return params


def conv_block_reference(x_nchw, params):
    """Pure-JAX f32 reference (lax.conv) for correctness checking."""
    x = x_nchw
    for w_hwio, b in params:
        w_oihw = jnp.transpose(w_hwio, (3, 2, 0, 1))
        x = jax.lax.conv_general_dilated(
            x, w_oihw, window_strides=(1, 1), padding=((1, 1), (1, 1)),
            dimension_numbers=("NCHW", "OIHW", "NCHW"))
        x = jnp.maximum(x + b[None, :, None, None], 0.0)
    return x


if __name__ == "__main__":
    key = jax.random.PRNGKey(0)
    kx, kp = jax.random.split(key)

    # ConvBlock(inChannels=4, outChannels=8, convNum=2) at small shapes.
    N, Cin, H, W = 2, 4, 16, 16
    Cout, conv_num = 8, 2

    x = jax.random.normal(kx, (N, Cin, H, W), jnp.float32)
    params = make_conv_block_params(kp, Cin, Cout, conv_num)

    out = conv_block_forward(x, params)
    out = jax.block_until_ready(out)

    ref = conv_block_reference(x, params)
    assert out.shape == (N, Cout, H, W)
    # bf16 MXU inputs / bf16 inter-layer activations (f32 accumulation).
    err = float(jnp.max(jnp.abs(out - ref)))
    assert jnp.allclose(out, ref, atol=5e-2, rtol=5e-2), f"max abs err {err}"

    print("KERNEL_OK")
</pallas_src>

<mosaic_0001>
module attributes {stable_mosaic.version = 11 : i64} {
  func.func @conv_block_kernel(%arg0: i32, %arg1: memref<1x16x128xbf16, #tpu.memory_space<vmem>>, %arg2: memref<6x128x128xbf16, #tpu.memory_space<vmem>>, %arg3: memref<2x128xf32, #tpu.memory_space<vmem>>, %arg4: memref<1x16x128xf32, #tpu.memory_space<vmem>>, %arg5: memref<18x128xbf16, #tpu.memory_space<vmem>>, %arg6: memref<18x128xbf16, #tpu.memory_space<vmem>>) attributes {dimension_semantics = [#tpu.dimension_semantics<parallel>], iteration_bounds = array<i64: 2>, scalar_prefetch = 0 : i64, scratch_operands = 2 : i64, tpu.core_type = #tpu.core_type<tc>, window_params = [{transform_indices = @transform_0, window_bounds = array<i64: 1, 16, 128>}, {pipeline_mode = #tpu.pipeline_mode<synchronous>, transform_indices = @transform_1, window_bounds = array<i64: 6, 128, 128>}, {pipeline_mode = #tpu.pipeline_mode<synchronous>, transform_indices = @transform_2, window_bounds = array<i64: 2, 128>}, {transform_indices = @transform_3, window_bounds = array<i64: 1, 16, 128>}]} {
    %cst = arith.constant 0.000000e+00 : bf16
    %0 = vector.broadcast %cst : bf16 to vector<1x128xbf16>
    %c0 = arith.constant 0 : index
    %c0_0 = arith.constant 0 : index
    %1 = vector.load %arg5[%c0, %c0_0] : memref<18x128xbf16, #tpu.memory_space<vmem>>, vector<1x128xbf16>
    tpu.vector_store %arg5[%c0, %c0_0], %0 {strides = array<i32>} : memref<18x128xbf16, #tpu.memory_space<vmem>>, vector<1x128xbf16>,
    %c17 = arith.constant 17 : index
    %c0_1 = arith.constant 0 : index
    %2 = vector.load %arg5[%c17, %c0_1] : memref<18x128xbf16, #tpu.memory_space<vmem>>, vector<1x128xbf16>
    tpu.vector_store %arg5[%c17, %c0_1], %0 {strides = array<i32>} : memref<18x128xbf16, #tpu.memory_space<vmem>>, vector<1x128xbf16>,
    %c0_2 = arith.constant 0 : index
    %c0_3 = arith.constant 0 : index
    %3 = vector.load %arg6[%c0_2, %c0_3] : memref<18x128xbf16, #tpu.memory_space<vmem>>, vector<1x128xbf16>
    tpu.vector_store %arg6[%c0_2, %c0_3], %0 {strides = array<i32>} : memref<18x128xbf16, #tpu.memory_space<vmem>>, vector<1x128xbf16>,
    %c17_4 = arith.constant 17 : index
    %c0_5 = arith.constant 0 : index
    %4 = vector.load %arg6[%c17_4, %c0_5] : memref<18x128xbf16, #tpu.memory_space<vmem>>, vector<1x128xbf16>
    tpu.vector_store %arg6[%c17_4, %c0_5], %0 {strides = array<i32>} : memref<18x128xbf16, #tpu.memory_space<vmem>>, vector<1x128xbf16>,
    %c0_6 = arith.constant 0 : index
    %c0_7 = arith.constant 0 : index
    %c0_8 = arith.constant 0 : index
    %5 = vector.load %arg1[%c0_6, %c0_7, %c0_8] : memref<1x16x128xbf16, #tpu.memory_space<vmem>>, vector<1x16x128xbf16>
    %6 = vector.shape_cast %5 : vector<1x16x128xbf16> to vector<16x128xbf16>
    %c1 = arith.constant 1 : index
    %c0_9 = arith.constant 0 : index
    %7 = vector.load %arg5[%c1, %c0_9] : memref<18x128xbf16, #tpu.memory_space<vmem>>, vector<16x128xbf16>
    tpu.vector_store %arg5[%c1, %c0_9], %6 {strides = array<i32>} : memref<18x128xbf16, #tpu.memory_space<vmem>>, vector<16x128xbf16>,
    %cst_10 = arith.constant 0.000000e+00 : f32
    %8 = vector.broadcast %cst_10 : f32 to vector<16x128xf32>
    %c0_11 = arith.constant 0 : index
    %c0_12 = arith.constant 0 : index
    %9 = vector.load %arg5[%c0_11, %c0_12] : memref<18x128xbf16, #tpu.memory_space<vmem>>, vector<16x128xbf16>
    %c0_13 = arith.constant 0 : index
    %c0_14 = arith.constant 0 : index
    %c0_15 = arith.constant 0 : index
    %10 = vector.load %arg2[%c0_13, %c0_14, %c0_15] : memref<6x128x128xbf16, #tpu.memory_space<vmem>>, vector<1x128x128xbf16>
    %11 = vector.shape_cast %10 : vector<1x128x128xbf16> to vector<128x128xbf16>
    %cst_16 = arith.constant dense<0.000000e+00> : vector<16x128xf32>
    %12 = tpu.matmul %9, %11, %cst_16 {dimension_numbers = #tpu.dot_dimension_numbers<[1], [0], [0], [1], [0, 0, 1, 1], [], []>} : vector<16x128xbf16>, vector<128x128xbf16>, vector<16x128xf32> -> vector<16x128xf32>
    %13 = arith.addf %8, %12 : vector<16x128xf32>
    %c1_17 = arith.constant 1 : index
    %c0_18 = arith.constant 0 : index
    %14 = vector.load %arg5[%c1_17, %c0_18] : memref<18x128xbf16, #tpu.memory_space<vmem>>, vector<16x128xbf16>
    %c1_19 = arith.constant 1 : index
    %c0_20 = arith.constant 0 : index
    %c0_21 = arith.constant 0 : index
    %15 = vector.load %arg2[%c1_19, %c0_20, %c0_21] : memref<6x128x128xbf16, #tpu.memory_space<vmem>>, vector<1x128x128xbf16>
    %16 = vector.shape_cast %15 : vector<1x128x128xbf16> to vector<128x128xbf16>
    %cst_22 = arith.constant dense<0.000000e+00> : vector<16x128xf32>
    %17 = tpu.matmul %14, %16, %cst_22 {dimension_numbers = #tpu.dot_dimension_numbers<[1], [0], [0], [1], [0, 0, 1, 1], [], []>} : vector<16x128xbf16>, vector<128x128xbf16>, vector<16x128xf32> -> vector<16x128xf32>
    %18 = arith.addf %13, %17 : vector<16x128xf32>
    %c2 = arith.constant 2 : index
    %c0_23 = arith.constant 0 : index
    %19 = vector.load %arg5[%c2, %c0_23] : memref<18x128xbf16, #tpu.memory_space<vmem>>, vector<16x128xbf16>
    %c2_24 = arith.constant 2 : index
    %c0_25 = arith.constant 0 : index
    %c0_26 = arith.constant 0 : index
    %20 = vector.load %arg2[%c2_24, %c0_25, %c0_26] : memref<6x128x128xbf16, #tpu.memory_space<vmem>>, vector<1x128x128xbf16>
    %21 = vector.shape_cast %20 : vector<1x128x128xbf16> to vector<128x128xbf16>
    %cst_27 = arith.constant dense<0.000000e+00> : vector<16x128xf32>
    %22 = tpu.matmul %19, %21, %cst_27 {dimension_numbers = #tpu.dot_dimension_numbers<[1], [0], [0], [1], [0, 0, 1, 1], [], []>} : vector<16x128xbf16>, vector<128x128xbf16>, vector<16x128xf32> -> vector<16x128xf32>
    %23 = arith.addf %18, %22 : vector<16x128xf32>
    %c0_28 = arith.constant 0 : index
    %c0_29 = arith.constant 0 : index
    %24 = vector.load %arg3[%c0_28, %c0_29] : memref<2x128xf32, #tpu.memory_space<vmem>>, vector<1x128xf32>
    %25 = vector.broadcast %24 : vector<1x128xf32> to vector<16x128xf32>
    %26 = arith.addf %23, %25 : vector<16x128xf32>
    %cst_30 = arith.constant 0.000000e+00 : f32
    %27 = vector.broadcast %cst_30 : f32 to vector<16x128xf32>
    %28 = arith.maximumf %26, %27 : vector<16x128xf32>
    %29 = arith.truncf %28 : vector<16x128xf32> to vector<16x128xbf16>
    %c1_31 = arith.constant 1 : index
    %c0_32 = arith.constant 0 : index
    %30 = vector.load %arg6[%c1_31, %c0_32] : memref<18x128xbf16, #tpu.memory_space<vmem>>, vector<16x128xbf16>
    tpu.vector_store %arg6[%c1_31, %c0_32], %29 {strides = array<i32>} : memref<18x128xbf16, #tpu.memory_space<vmem>>, vector<16x128xbf16>,
    %cst_33 = arith.constant 0.000000e+00 : f32
    %31 = vector.broadcast %cst_33 : f32 to vector<16x128xf32>
    %c0_34 = arith.constant 0 : index
    %c0_35 = arith.constant 0 : index
    %32 = vector.load %arg6[%c0_34, %c0_35] : memref<18x128xbf16, #tpu.memory_space<vmem>>, vector<16x128xbf16>
    %c3 = arith.constant 3 : index
    %c0_36 = arith.constant 0 : index
    %c0_37 = arith.constant 0 : index
    %33 = vector.load %arg2[%c3, %c0_36, %c0_37] : memref<6x128x128xbf16, #tpu.memory_space<vmem>>, vector<1x128x128xbf16>
    %34 = vector.shape_cast %33 : vector<1x128x128xbf16> to vector<128x128xbf16>
    %cst_38 = arith.constant dense<0.000000e+00> : vector<16x128xf32>
    %35 = tpu.matmul %32, %34, %cst_38 {dimension_numbers = #tpu.dot_dimension_numbers<[1], [0], [0], [1], [0, 0, 1, 1], [], []>} : vector<16x128xbf16>, vector<128x128xbf16>, vector<16x128xf32> -> vector<16x128xf32>
    %36 = arith.addf %31, %35 : vector<16x128xf32>
    %c1_39 = arith.constant 1 : index
    %c0_40 = arith.constant 0 : index
    %37 = vector.load %arg6[%c1_39, %c0_40] : memref<18x128xbf16, #tpu.memory_space<vmem>>, vector<16x128xbf16>
    %c4 = arith.constant 4 : index
    %c0_41 = arith.constant 0 : index
    %c0_42 = arith.constant 0 : index
    %38 = vector.load %arg2[%c4, %c0_41, %c0_42] : memref<6x128x128xbf16, #tpu.memory_space<vmem>>, vector<1x128x128xbf16>
    %39 = vector.shape_cast %38 : vector<1x128x128xbf16> to vector<128x128xbf16>
    %cst_43 = arith.constant dense<0.000000e+00> : vector<16x128xf32>
    %40 = tpu.matmul %37, %39, %cst_43 {dimension_numbers = #tpu.dot_dimension_numbers<[1], [0], [0], [1], [0, 0, 1, 1], [], []>} : vector<16x128xbf16>, vector<128x128xbf16>, vector<16x128xf32> -> vector<16x128xf32>
    %41 = arith.addf %36, %40 : vector<16x128xf32>
    %c2_44 = arith.constant 2 : index
    %c0_45 = arith.constant 0 : index
    %42 = vector.load %arg6[%c2_44, %c0_45] : memref<18x128xbf16, #tpu.memory_space<vmem>>, vector<16x128xbf16>
    %c5 = arith.constant 5 : index
    %c0_46 = arith.constant 0 : index
    %c0_47 = arith.constant 0 : index
    %43 = vector.load %arg2[%c5, %c0_46, %c0_47] : memref<6x128x128xbf16, #tpu.memory_space<vmem>>, vector<1x128x128xbf16>
    %44 = vector.shape_cast %43 : vector<1x128x128xbf16> to vector<128x128xbf16>
    %cst_48 = arith.constant dense<0.000000e+00> : vector<16x128xf32>
    %45 = tpu.matmul %42, %44, %cst_48 {dimension_numbers = #tpu.dot_dimension_numbers<[1], [0], [0], [1], [0, 0, 1, 1], [], []>} : vector<16x128xbf16>, vector<128x128xbf16>, vector<16x128xf32> -> vector<16x128xf32>
    %46 = arith.addf %41, %45 : vector<16x128xf32>
    %c1_49 = arith.constant 1 : index
    %c0_50 = arith.constant 0 : index
    %47 = vector.load %arg3[%c1_49, %c0_50] : memref<2x128xf32, #tpu.memory_space<vmem>>, vector<1x128xf32>
    %48 = vector.broadcast %47 : vector<1x128xf32> to vector<16x128xf32>
    %49 = arith.addf %46, %48 : vector<16x128xf32>
    %cst_51 = arith.constant 0.000000e+00 : f32
    %50 = vector.broadcast %cst_51 : f32 to vector<16x128xf32>
    %51 = arith.maximumf %49, %50 : vector<16x128xf32>
    %c0_52 = arith.constant 0 : index
    %c0_53 = arith.constant 0 : index
    %c0_54 = arith.constant 0 : index
    %52 = vector.load %arg4[%c0_52, %c0_53, %c0_54] : memref<1x16x128xf32, #tpu.memory_space<vmem>>, vector<1x16x128xf32>
    %53 = vector.shape_cast %52 : vector<1x16x128xf32> to vector<16x128xf32>
    %54 = vector.shape_cast %51 : vector<16x128xf32> to vector<1x16x128xf32>
    tpu.vector_store %arg4[%c0_52, %c0_53, %c0_54], %54 {strides = array<i32>} : memref<1x16x128xf32, #tpu.memory_space<vmem>>, vector<1x16x128xf32>,
    return
  }
  func.func @transform_0(%arg0: i32) -> (i32, i32, i32) {
    %c0_i32 = arith.constant 0 : i32
    %c0_i32_0 = arith.constant 0 : i32
    %c0_i32_1 = arith.constant 0 : i32
    return %arg0, %c0_i32, %c0_i32_0 : i32, i32, i32
  }
  func.func @transform_1(%arg0: i32) -> (i32, i32, i32) {
    %c0_i32 = arith.constant 0 : i32
    %c0_i32_0 = arith.constant 0 : i32
    %c0_i32_1 = arith.constant 0 : i32
    %c0_i32_2 = arith.constant 0 : i32
    return %c0_i32, %c0_i32_0, %c0_i32_1 : i32, i32, i32
  }
  func.func @transform_2(%arg0: i32) -> (i32, i32) {
    %c0_i32 = arith.constant 0 : i32
    %c0_i32_0 = arith.constant 0 : i32
    %c0_i32_1 = arith.constant 0 : i32
    return %c0_i32, %c0_i32_0 : i32, i32
  }
  func.func @transform_3(%arg0: i32) -> (i32, i32, i32) {
    %c0_i32 = arith.constant 0 : i32
    %c0_i32_0 = arith.constant 0 : i32
    %c0_i32_1 = arith.constant 0 : i32
    return %arg0, %c0_i32, %c0_i32_0 : i32, i32, i32
  }
}

</mosaic_0001>

<bundles_post_ra>
// kernel: tpu_custom_call.1
= control target key start
LH: loop header
LB: loop body
LE: loop exit
PB: predicated region body
PF: predicated region fallthrough
CT: control target
= control target key end

     0   :  { %8 = vsyncpa [#allocation5], 0  ;;  %s1701_s0 = inlined_call_operand.hbm [shape: bf16[2,16,128], index: 0, kind: input, shape index: {}]   ;;  %s1702_s1 = inlined_call_operand.hbm [shape: bf16[6,128,128], index: 1, kind: input, shape index: {}]   ;;  %s1703_s2 = inlined_call_operand.hbm [shape: f32[2,128], index: 2, kind: input, shape index: {}]   ;;  %s1704_s3 = inlined_call_operand.hbm [shape: f32[2,16,128], index: 3, kind: output, shape index: {}]  }
   0x1   :  { %10 = vsyncpa [#allocation5 + $0x1], 0 }
   0x2   :  { %11 = vsyncpa [#allocation8], 0 }
   0x3   :  { %12 = vsyncpa [#allocation6], 0 }
   0x4   :  { %14 = vsyncpa [#allocation6 + $0x1], 0  ;;  %s1504_s12 = smov 0   ;;  %s1506_s13 = smov 0  }
   0x5   :  { %s1508_s14 = smov 0   ;;  %s1510_s15 = smov 0  }
   0x6 LB: > { %s1525_s16 = sadd.s32 4294967295, %s1476_s15   ;;  %s969_s17 = sadd.s32 4294967294, %s1476_s15   ;;  %s1476_s15 = sphi %s1510_s15, %s1722_s15   ;;  %s1472_s14 = sphi %s1508_s14, %s1721_s14   ;;  %s1468_s13 = sphi %s1506_s13, %s1720_s13   ;;  %s1464_s12 = sphi %s1504_s12, %s1719_s12  }
   0x7   : > { %p40_p0 = scmp.ne.s32.totalorder %s1468_s13, %s1464_s12  ;;  %p41_p1 = scmp.eq.s32.totalorder %s1525_s16, 0 }
   0x8   : > { %p106_p2 = scmp.eq.s32.totalorder %s1525_s16, 1  ;;  %p112_p3 = scmp.eq.s32.totalorder %s969_s17, 1 }
   0x9   : > { %p1534_p4 = por %p41_p1, %p40_p0  ;;  %p970_p5 = scmp.ge.s32.totalorder %s1476_s15, 1 }
   0xa   : > { %p1539_p6 = por %p112_p3, %p40_p0  ;;  %p119_p7 = scmp.lt.s32.totalorder %s1476_s15, 3 }
   0xb   : > { %s130_s22 = sshll.u32 %s1702_s1, 4  ;;  %s1478_s24 = smov [#allocation7]   ;;  %s131_s22 = int_to_ptr.hbm [resolvable:$true] %s130_s22 }
   0xc   : > { %p1547_p8 = pnand %p970_p5, %p119_p7  ;;  %s132_s25 = sshll.u32 %s1478_s24, 4  ;;  %s133_s25 = int_to_ptr.vmem [resolvable:$true] %s132_s25 }
   0xd   : > { %s145_s28 = sshll.u32 %s1703_s2, 4  ;;  %s1479_s29 = smov 64   ;;  %s146_s28 = int_to_ptr.hbm [resolvable:$true] %s145_s28 }
   0xe   : > { %p1255_p9 = pneg %p1547_p8  ;;  %s1480_s30 = smov 4  }
   0xf   : > { %s1481_s4 = smov [#allocation9]   ;;  %s1563_s6 = sadd.s32 1, %s1476_s15  }
  0x10   : > { %p1256_p10 = pnand %p1255_p9, %p41_p1  ;;  %s147_s5 = sshll.u32 %s1481_s4, 4  ;;  %s148_s5 = int_to_ptr.vmem [resolvable:$true] %s147_s5 }
  0x11   : > { %s27_s7 = sadd.s32 1, %s1472_s14  ;;  %s24_s8 = ssub.s32 %s1476_s15, %s1563_s6 }
  0x12   : > { %1258 = dma.hbm_to_vmem [thread:$0]  (!%p1256_p10), %s131_s22, 6144, %s133_s25, [#allocation8], %s1479_s29, %s1479_s29, %s1480_s30  }
  0x13   : > { %1261 = dma.hbm_to_vmem [thread:$0]  (!%p1256_p10), %s146_s28, 32, %s148_s5, [#allocation8]  }
  0x14   : > { %p34_p12 = scmp.ne.s32.totalorder %s1472_s14, %s1468_s13  ;;  %p25_p13 = scmp.eq.s32.totalorder %s24_s8, 0 }
  0x15   : > { %p35_p0 = scmp.eq.s32.totalorder %s1476_s15, 0  ;;  %p1272_p5 = scmp.lt.s32.totalorder %s1476_s15, 2 }
  0x16   : > { %p1573_p3 = por %p106_p2, %p34_p12  ;;  %s158_s11 = sand.u32 1, %s1472_s14  }
  0x17   : > { %s1579_s10 = scalar_select %p25_p13, %s1472_s14, %s27_s7  }
  0x18   : > { %p36_p7 = por %p35_p0, %p34_p12  ;;  %s974_s17 = sshll.u32 %s158_s11, 3 }
  0x19   : > { %s1179_s20 = sshll.u32 %s1476_s15, 3  ;;  %s162_s25 = scalar_lea.vmem [#allocation4], %s974_s17 }
  0x1a   : > { %s167_s24 = scalar_lea.hbm %s1701_s0, %s1179_s20  ;;  %s170_s26 = sshll.u32 %s162_s25, 4  ;;  %s171_s26 = int_to_ptr.vmem [resolvable:$true] %s170_s26 }
  0x1b   : > { %s168_s27 = sshll.u32 %s167_s24, 4  ;;  %p1586_p2 = pnand %p1272_p5, %p36_p7  ;;  %s169_s27 = int_to_ptr.hbm [resolvable:$true] %s168_s27 }
  0x1c   : > { %s159_s4 = scalar_lea.sflag [#allocation5], %s158_s11  ;;  %s1376_s5 = sshra.s32 %s169_s27, 4  ;;  %s1377_s5 = int_to_ptr.hbm [resolvable:$true] %s1376_s5 }
  0x1d   : > { %s1378_s7 = scalar_lea.hbm %s1377_s5, 8  ;;  %p1380_p10 = pneg %p1586_p2 }
  0x1e   : > { %p1379_p9 = scmp.ne.s32.totalorder %s1377_s5, %s1378_s7  ;;  %s1383_s20 = scalar_lea.hbm %s1701_s0, 16 }
  0x1f   : > { %p1384_p0 = scmp.lt.s32.totalorder %s1377_s5, %s1701_s0  ;;  %p1385_p5 = scmp.lt.s32.totalorder %s1383_s20, %s1378_s7 }
  0x20   : > { %p1381_p12 = pnand %p1380_p10, %p1379_p9 }
  0x21   : > { %p1386_p7 = por %p1385_p5, %p1384_p0 }
  0x22   : > { %p1382_p13 = pneg %p1381_p12 }
  0x24   : > { %p1387_p11 = pnand %p1386_p7, %p1382_p13 }
  0x26   : > { %1390 = shalt.err (!%p1387_p11)
}
  0x27   : > { %1265 = dma.hbm_to_vmem [thread:$0]  (!%p1586_p2), %s169_s27, 128, %s171_s26, %s159_s4, %s1479_s29, %s1479_s29, %s1480_s30  }
  0x28   : > { %182 = sbr.rel (%p1547_p8) target bundleno = 407 (0x197), region = 32  ;;  %s1606_s11 = sand.u32 (!%p1547_p8), 1, %s1468_s13  }
  0x29   : > { %s978_s24 = sshll.u32 (!%p1547_p8), %s1606_s11, 3  ;;  %s185_s25 = scalar_lea.sflag (!%p1547_p8), [#allocation5], %s1606_s11 }
  0x2a   : > { %s1610_s5 = scalar_lea.vmem (!%p1547_p8), [#allocation4], %s978_s24 }
  0x2d   : > { %1451 = dma.done.wait (%p1534_p4), %s185_s25, 128  }
  0x2e   : > { %1453 = vsyncadd (%p1534_p4), %s185_s25, 4294967168 }
  0x2f   : > { %1455 = dma.done.wait (%p41_p1), [#allocation8], 6176  }
  0x30   : > { %1457 = vsyncadd (%p41_p1), [#allocation8], 4294961120  ;;  %v1195_v0 = vld [vmem:[#allocation7 + $0x78] sm:$0xff]  ;;  %v1194_v3 = vld [vmem:[#allocation7 + $0x70] sm:$0xff]  ;;  %vm224_vm0 = vsmask.f32 256 }
  0x31   : > { %v1187_v1 = vld [vmem:[#allocation7 + $0x38] sm:$0xff]  ;;  %379 = vmatpush.bf16.msra.mxu0 %v1195_v0  ;;  %v1186_v4 = vld [vmem:[#allocation7 + $0x30] sm:$0xff]  ;;  %vm223_vm1 = vcmask 1040384   ;;  %vm229_vm2 = vsmask.f32 7938  ;;  %v1193_v7 = vld [vmem:[#allocation7 + $0x68] sm:$0xff] }
  0x32   : > { %v1203_v2 = vld [vmem:[#allocation7 + $0xb8] sm:$0xff]  ;;  %442 = vmatpush.bf16.msra.mxu1 %v1187_v1  ;;  %v1202_v5 = vld [vmem:[#allocation7 + $0xb0] sm:$0xff]  ;;  %vm1621_vm3 = vmand %vm223_vm1, %vm224_vm0  ;;  %vm242_vm5 = vsmask.f32 4368  ;;  %vm264_vm6 = vcmask 1043456   ;;  %vm477_vm9 = vcmask 1046528  }
  0x33   : > { %530 = vmatpush.bf16.msra.mxu2 %v1203_v2  ;;  %v1185_v8 = vld [vmem:[#allocation7 + $0x28] sm:$0xff]  ;;  %vm1626_vm4 = vmand %vm223_vm1, %vm229_vm2  ;;  %v1192_v11 = vld [vmem:[#allocation7 + $0x60] sm:$0xff]  ;;  %vm317_vm10 = vsmask.f32 7424  ;;  %s981_s18 = sshll.u32 %s1606_s11, 4  ;;  %s1228_s23 = sshll.u32 %s1525_s16, 4 }
  0x34   : > { %v1201_v10 = vld [vmem:[#allocation7 + $0xa8] sm:$0xff]  ;;  %v1184_v12 = vld [vmem:[#allocation7 + $0x20] sm:$0xff]  ;;  %v226_v13 = vld [vmem:[#allocation2] sm:$0x1]  ;;  %s873_s26 = scalar_lea.hbm %s1704_s3, %s1228_s23  ;;  %s221_s27 = scalar_lea.vmem [#allocation10], %s981_s18 }
  0x35   : > { %380 = vmatpush.bf16.msra.mxu0 %v1194_v3  ;;  %v231_v14 = vld [vmem:[#allocation2 + $0x8] sm:$0x1]  ;;  %v240_v15 = vld [vmem:[%s1610_s5] sm:$0xf]  ;;  %v227_v16 = vsel %vm1621_vm3, 0, %v226_v13  ;;  %vm1638_vm7 = vmor %vm224_vm0, %vm242_vm5  ;;  %s874_s28 = sshll.u32 %s221_s27, 4  ;;  %s875_s28 = int_to_ptr.vmem [resolvable:$true] %s874_s28 }
  0x36   : > { %443 = vmatpush.bf16.msra.mxu1 %v1186_v4  ;;  %v232_v17 = vsel %vm1626_vm4, 0, %v231_v14  ;;  %v241_v18 = vld [vmem:[%s1610_s5 + $0x4] sm:$0xf]  ;;  %v245_v19 = vshrl.u32 %v240_v15, 16  ;;  %v248_v20 = vshll.u32 %v240_v15, 16  ;;  %v1200_v23 = vld [vmem:[#allocation7 + $0xa0] sm:$0xff]  ;;  %vm1643_vm8 = vmand %vm264_vm6, %vm229_vm2 }
  0x37   : > { %531 = vmatpush.bf16.msra.mxu2 %v1202_v5  ;;  %228 = vst [vmem:[#allocation2] sm:$0x1] %v227_v16  ;;  %v253_v21 = vshrl.u32 %v241_v18, 16  ;;  %v256_v22 = vshll.u32 %v241_v18, 16  ;;  %v1191_v28 = vld [vmem:[#allocation7 + $0x58] sm:$0xff]  ;;  %v1190_v37 = vld [vmem:[#allocation7 + $0x50] sm:$0xff] }
  0x38   : > { %233 = vst [vmem:[#allocation2 + $0x8] sm:$0x1] %v232_v17  ;;  %v247_v24 = vrot.slane %v245_v19, 7  ;;  %v1183_v29 = vld [vmem:[#allocation7 + $0x18] sm:$0xff]  ;;  %v1182_v38 = vld [vmem:[#allocation7 + $0x10] sm:$0xff]  ;;  %v1189_v43 = vld [vmem:[#allocation7 + $0x48] sm:$0xff] }
  0x39   : > { %381 = vmatpush.bf16.msra.mxu0 %v1193_v7  ;;  %v255_v25 = vrot.slane %v253_v21, 7  ;;  %v1199_v32 = vld [vmem:[#allocation7 + $0x98] sm:$0xff]  ;;  %v1198_v41 = vld [vmem:[#allocation7 + $0x90] sm:$0xff]  ;;  %v1181_v44 = vld [vmem:[#allocation7 + $0x8] sm:$0xff]  ;;  %s876_s4 = sshll.u32 %s873_s26, 4  ;;  %s862_s16 = scalar_lea.sflag [#allocation6], %s1606_s11  ;;  %s877_s4 = int_to_ptr.hbm [resolvable:$true] %s876_s4 }
  0x3a   : > { %444 = vmatpush.bf16.msra.mxu1 %v1185_v8  ;;  %v251_v27 = vrot.slane %v247_v24, 4  ;;  %v250_v30 = vor.u32 %v248_v20, %v247_v24  ;;  %v1197_v45 = vld [vmem:[#allocation7 + $0x88] sm:$0xff]  ;;  %v1188_v47 = vld [vmem:[#allocation7 + $0x40] sm:$0xff]  ;;  %v1211_v4 = vld [vmem:[#allocation7 + $0xf8] sm:$0xff]  ;;  %s1420_s7 = sshra.s32 %s877_s4, 4  ;;  %s1426_s21 = scalar_lea.hbm %s1704_s3, 32  ;;  %s1421_s7 = int_to_ptr.hbm [resolvable:$true] %s1420_s7 }
  0x3b   : > { %532 = vmatpush.bf16.msra.mxu2 %v1201_v10  ;;  %v258_v31 = vor.u32 %v256_v22, %v255_v25  ;;  %v260_v33 = vrot.slane %v255_v25, 4  ;;  %v1180_v48 = vld [vmem:[#allocation7] sm:$0xff]  ;;  %v1210_v5 = vld [vmem:[#allocation7 + $0xf0] sm:$0xff]  ;;  %v1227_v7 = vld [vmem:[#allocation7 + $0x178] sm:$0xff]  ;;  %s1422_s8 = scalar_lea.hbm %s1421_s7, 16  ;;  %p1427_p11 = scmp.lt.s32.totalorder %s1421_s7, %s1704_s3 }
  0x3c   : > { %v1196_v51 = vld [vmem:[#allocation7 + $0x80] sm:$0xff]  ;;  %v1209_v8 = vld [vmem:[#allocation7 + $0xe8] sm:$0xff]  ;;  %v1219_v10 = vld [vmem:[#allocation7 + $0x138] sm:$0xff]  ;;  %p1423_p1 = scmp.ne.s32.totalorder %s1421_s7, %s1422_s8  ;;  %p1428_p2 = scmp.lt.s32.totalorder %s1426_s21, %s1422_s8 }
  0x3d   : > { %382 = vmatpush.bf16.msra.mxu0 %v1192_v11  ;;  %v259_v35 = vsel %vm1638_vm7, %v251_v27, %v258_v31  ;;  %v234_v2 = vld [vmem:[#allocation3] sm:$0x1]  ;;  %687 = vmatpush.bf16.msra.mxu3 %v1219_v10  ;;  %v1226_v11 = vld [vmem:[#allocation7 + $0x170] sm:$0xff]  ;;  %v237_v14 = vld [vmem:[#allocation3 + $0x8] sm:$0x1] }
  0x3e   : > { %445 = vmatpush.bf16.msra.mxu1 %v1184_v12  ;;  %v266_v36 = vld [vmem:[#allocation2] sm:$0xf]  ;;  %269 = vst [vmem:[#allocation2 + $0x4] sm:$0xf] %v259_v35  ;;  %v235_v3 = vsel %vm1621_vm3, 0, %v234_v2  ;;  %v1208_v12 = vld [vmem:[#allocation7 + $0xe0] sm:$0xff]  ;;  %p1424_p4 = pnand %p1423_p1, %p1573_p3  ;;  %p1429_p9 = por %p1428_p2, %p1427_p11 }
  0x3f   : > { %533 = vmatpush.bf16.msra.mxu2 %v1200_v23  ;;  %v267_v39 = vsel %vm1643_vm8, %v250_v30, %v266_v36  ;;  %v270_v40 = vld [vmem:[#allocation2 + $0x8] sm:$0x1]  ;;  %236 = vst [vmem:[#allocation3] sm:$0x1] %v235_v3  ;;  %v1218_v13 = vld [vmem:[#allocation7 + $0x130] sm:$0xff]  ;;  %v238_v15 = vsel %vm1626_vm4, 0, %v237_v14 }
  0x40   : > { %268 = vst [vmem:[#allocation2] sm:$0xf] %v267_v39  ;;  %v271_v42 = vsel %vm1621_vm3, %v260_v33, %v270_v40  ;;  %v1225_v16 = vld [vmem:[#allocation7 + $0x168] sm:$0xff]  ;;  %v1207_v17 = vld [vmem:[#allocation7 + $0xd8] sm:$0xff]  ;;  %v1224_v19 = vld [vmem:[#allocation7 + $0x160] sm:$0xff]  ;;  %p1425_p8 = pneg %p1424_p4 }
  0x41   : > { %383 = vmatpush.bf16.msra.mxu0 %v1191_v28  ;;  %272 = vst [vmem:[#allocation2 + $0x8] sm:$0x1] %v271_v42  ;;  %688 = vmatpush.bf16.msra.mxu3 %v1218_v13  ;;  %v1217_v18 = vld [vmem:[#allocation7 + $0x128] sm:$0xff]  ;;  %v1206_v20 = vld [vmem:[#allocation7 + $0xd0] sm:$0xff]  ;;  %v1216_v21 = vld [vmem:[#allocation7 + $0x120] sm:$0xff] }
  0x42   : > { %446 = vmatpush.bf16.msra.mxu1 %v1183_v29  ;;  %239 = vst [vmem:[#allocation3 + $0x8] sm:$0x1] %v238_v15  ;;  %v1223_v22 = vld [vmem:[#allocation7 + $0x158] sm:$0xff]  ;;  %v1205_v23 = vld [vmem:[#allocation7 + $0xc8] sm:$0xff]  ;;  %v1222_v9 = vld [vmem:[#allocation7 + $0x150] sm:$0xff]  ;;  %p1430_p10 = pnand %p1429_p9, %p1425_p8 }
  0x43   : > { %534 = vmatpush.bf16.msra.mxu2 %v1199_v32  ;;  %v1215_v24 = vld [vmem:[#allocation7 + $0x118] sm:$0xff]  ;;  %v1204_v27 = vld [vmem:[#allocation7 + $0xc0] sm:$0xff]  ;;  %v1214_v29 = vld [vmem:[#allocation7 + $0x110] sm:$0xff] }
  0x44   : > { %v1314_v31 = vld [vmem:[#allocation9] ss:$0 sm:$0xff]  ;;  %v1221_v33 = vld [vmem:[#allocation7 + $0x148] sm:$0xff] }
  0x45   : > { %384 = vmatpush.bf16.msra.mxu0 %v1190_v37  ;;  %v1237_v46 = vld [vmem:[#allocation2] sm:$0xf0]  ;;  %689 = vmatpush.bf16.msra.mxu3 %v1217_v18  ;;  %v1213_v36 = vld [vmem:[#allocation7 + $0x108] sm:$0xff]  ;;  %v1220_v37 = vld [vmem:[#allocation7 + $0x140] sm:$0xff] }
  0x46   : > { %447 = vmatpush.bf16.msra.mxu1 %v1182_v38 }
  0x47   : > { %535 = vmatpush.bf16.msra.mxu2 %v1198_v41  ;;  %v1230_v49 = vld [vmem:[#allocation2] sm:$0xff]   ;;  %v1212_v41 = vld [vmem:[#allocation7 + $0x100] sm:$0xff] }
  0x48   : > { %v1238_v50 = vld [vmem:[#allocation2] sm:$0xe]  ;;  %v291_v52 = vld [vmem:[#allocation2 + $0x8] sm:$0x1]  ;;  %v321_v53 = vshll.u32 %v1230_v49, 16  ;;  %v319_v56 = vshrl.u32 %v1230_v49, 16 }
  0x49   : > { %385 = vmatpush.bf16.msra.mxu0 %v1189_v43  ;;  %v1239_v54 = vor.u32 %v1238_v50, %v1237_v46  ;;  %v314_v55 = vunpack.c.l.b16 %v291_v52  ;;  %690 = vmatpush.bf16.msra.mxu3 %v1216_v21  ;;  %v1315_v21 = vld [vmem:[#allocation9 + $0x1] ss:$0 sm:$0xff] }
  0x4a   : > { %448 = vmatpush.bf16.msra.mxu1 %v1181_v44  ;;  %v323_v57 = vrot.slane %v321_v53, 1 }
  0x4b   : > { %536 = vmatpush.bf16.msra.mxu2 %v1197_v45  ;;  %v316_v58 = vpack.c.b16 %v314_v55, %v314_v55  ;;  %v478_v59 = vrot.slane %v1239_v54, 1 }
  0x4c   : > { %v324_v60 = vor.u32 %v323_v57, %v319_v56 }
  0x4d   : > { %386 = vmatpush.bf16.msra.mxu0 %v1188_v47  ;;  %v326_v61 = vshll.u32 %v316_v58, 16  ;;  %v479_v62 = vrot.slane %v316_v58, 1  ;;  %691 = vmatpush.bf16.msra.mxu3 %v1215_v24 }
  0x4e   : > { %449 = vmatpush.bf16.msra.mxu1 %v1180_v48 }
  0x4f   : > { %537 = vmatpush.bf16.msra.mxu2 %v1196_v51  ;;  %v328_v63 = vrot.slane %v326_v61, 1  ;;  %v480_v0 = vsel %vm477_vm9, %v478_v59, %v479_v62  ;;  %v574_v51 = vld [vmem:[#allocation3] sm:$0xf]  ;;  %v578_v59 = vld [vmem:[#allocation3 + $0x8] sm:$0x1] }
  0x51   : > { %450 = vmatmul.bf16.vlgmr.msra.gmra.mxu1 %v1230_v49  ;;  %v329_v1 = vsel %vm317_vm10, %v324_v60, %v328_v63  ;;  %750 = vmatpush.bf16.msrb.mxu0 %v1211_v4 }
  0x52   : > { %538 = vmatmul.bf16.vlgmr.msra.gmra.mxu2 %v480_v0  ;;  %387 = vmatmul.bf16.vlgmr.msra.gmra.mxu0 %v329_v1 }
  0x53   : > { %837 = vmatpush.bf16.msrb.mxu1 %v1227_v7  ;;  %692 = vmatpush.bf16.msra.mxu3 %v1214_v29 }
  0x55   : > { %751 = vmatpush.bf16.msrb.mxu0 %v1210_v5 }
  0x57   : > { %838 = vmatpush.bf16.msrb.mxu1 %v1226_v11  ;;  %693 = vmatpush.bf16.msra.mxu3 %v1213_v36 }
  0x59   : > { %752 = vmatpush.bf16.msrb.mxu0 %v1209_v8 }
  0x5b   : > { %839 = vmatpush.bf16.msrb.mxu1 %v1225_v16  ;;  %694 = vmatpush.bf16.msra.mxu3 %v1212_v41 }
  0x5d   : > { %753 = vmatpush.bf16.msrb.mxu0 %v1208_v12 }
  0x5f   : > { %840 = vmatpush.bf16.msrb.mxu1 %v1224_v19 }
  0x61   : > { %754 = vmatpush.bf16.msrb.mxu0 %v1207_v17 }
  0x63   : > { %841 = vmatpush.bf16.msrb.mxu1 %v1223_v22 }
  0x65   : > { %755 = vmatpush.bf16.msrb.mxu0 %v1206_v20 }
  0x67   : > { %842 = vmatpush.bf16.msrb.mxu1 %v1222_v9 }
  0x69   : > { %756 = vmatpush.bf16.msrb.mxu0 %v1205_v23 }
  0x6b   : > { %843 = vmatpush.bf16.msrb.mxu1 %v1221_v33 }
  0x6d   : > { %757 = vmatpush.bf16.msrb.mxu0 %v1204_v27 }
  0x6f   : > { %844 = vmatpush.bf16.msrb.mxu1 %v1220_v37 }
  0xce   : > { %v451_v25 = vpop.f32.mrf.mxu1 }
  0xcf   : > { %v388_v28 = vpop.f32.mrf.mxu0 }
  0xd0   : > { %v452_v30 = vadd.f32 %v451_v25, %v388_v28 }
  0xd5   : > { %v539_v32 = vpop.f32.mrf.mxu2 }
  0xd6   : > { %v544_v35 = vadd.f32 %v539_v32, %v452_v30  ;;  %v453_v40 = vpop.f32.mrf.mxu1 }
  0xd7   : > { %v390_v39 = vpop.f32.mrf.mxu0 }
  0xd8   : > { %v548_v38 = vadd.f32 %v1314_v31, %v544_v35  ;;  %v454_v44 = vadd.f32 %v453_v40, %v390_v39 }
  0xda   : > { %v550_v42 = vmax.f32 %v548_v38, 0.0 }
  0xdc   : > { %v552_v43 = vpack.c.bf16 %v550_v42, %v550_v42 }
  0xdd   : > { %v541_v45 = vpop.f32.mrf.mxu2 }
  0xde   : > { %v555_v46 = vshrl.u32 %v552_v43, 16  ;;  %v545_v47 = vadd.f32 %v541_v45, %v454_v44  ;;  %v558_v49 = vshll.u32 %v552_v43, 16 }
  0xe0   : > { %v557_v48 = vrot.slane %v555_v46, 7  ;;  %v549_v50 = vadd.f32 %v1314_v31, %v545_v47 }
  0xe2   : > { %v560_v52 = vor.u32 %v558_v49, %v557_v48  ;;  %v551_v53 = vmax.f32 %v549_v50, 0.0  ;;  %v561_v60 = vrot.slane %v557_v48, 4 }
  0xe4   : > { %v575_v54 = vsel %vm1643_vm8, %v560_v52, %v574_v51  ;;  %v553_v55 = vpack.c.bf16 %v551_v53, %v551_v53 }
  0xe5   : > { %576 = vst [vmem:[#allocation3] sm:$0xf] %v575_v54 }
  0xe6   : > { %v563_v56 = vshrl.u32 %v553_v55, 16  ;;  %v566_v58 = vshll.u32 %v553_v55, 16 }
  0xe8   : > { %v565_v57 = vrot.slane %v563_v56, 7 }
  0xea   : > { %v568_v61 = vor.u32 %v566_v58, %v565_v57  ;;  %v570_v62 = vrot.slane %v565_v57, 4 }
  0xec   : > { %v569_v63 = vsel %vm1638_vm7, %v561_v60, %v568_v61  ;;  %v579_v0 = vsel %vm1621_vm3, %v570_v62, %v578_v59  ;;  %v1241_v4 = vld [vmem:[#allocation3] sm:$0xe] }
  0xed   : > { %577 = vst [vmem:[#allocation3 + $0x4] sm:$0xf] %v569_v63 }
  0xee   : > { %580 = vst [vmem:[#allocation3 + $0x8] sm:$0x1] %v579_v0 }
  0xf4   : > { %v1234_v1 = vld [vmem:[#allocation3] sm:$0xff]  }
  0xf5   : > { %v1240_v34 = vld [vmem:[#allocation3] sm:$0xf0]  ;;  %v629_v2 = vshll.u32 %v1234_v1, 16  ;;  %758 = vmatmul.bf16.vlgmr.msrb.gmra.mxu0 %v1234_v1  ;;  %v600_v3 = vld [vmem:[#allocation3 + $0x8] sm:$0x1]  ;;  %v627_v11 = vshrl.u32 %v1234_v1, 16 }
  0xf6   : > { %v623_v5 = vunpack.c.l.b16 %v600_v3  ;;  %v1242_v7 = vor.u32 %v1241_v4, %v1240_v34 }
  0xf7   : > { %v631_v8 = vrot.slane %v629_v2, 1 }
  0xf8   : > { %v625_v10 = vpack.c.b16 %v623_v5, %v623_v5  ;;  %v785_v12 = vrot.slane %v1242_v7, 1 }
  0xf9   : > { %v632_v14 = vor.u32 %v631_v8, %v627_v11 }
  0xfa   : > { %v786_v26 = vrot.slane %v625_v10, 1  ;;  %v634_v13 = vshll.u32 %v625_v10, 16 }
  0xfc   : > { %v787_v6 = vsel %vm477_vm9, %v785_v12, %v786_v26  ;;  %v636_v15 = vrot.slane %v634_v13, 1 }
  0xfd   : > { %845 = vmatmul.bf16.vlgmr.msrb.gmra.mxu1 %v787_v6 }
  0xfe   : > { %v637_v16 = vsel %vm317_vm10, %v632_v14, %v636_v15 }
  0xff   : > { %695 = vmatmul.bf16.vlgmr.msra.gmra.mxu3 %v637_v16 }
 0x172   : > { %v759_v17 = vpop.f32.mrf.mxu0 }
 0x17a   : > { %v846_v18 = vpop.f32.mrf.mxu1  ;;  %v761_v25 = vpop.f32.mrf.mxu0 }
 0x182   : > { %v696_v19 = vpop.f32.mrf.mxu3  ;;  %v848_v28 = vpop.f32.mrf.mxu1 }
 0x183   : > { %v760_v20 = vadd.f32 %v759_v17, %v696_v19 }
 0x185   : > { %v851_v22 = vadd.f32 %v846_v18, %v760_v20 }
 0x187   : > { %v855_v23 = vadd.f32 %v1315_v21, %v851_v22 }
 0x189   : > { %v857_v24 = vmax.f32 %v855_v23, 0.0 }
 0x18a   : > { %v698_v9 = vpop.f32.mrf.mxu3 }
 0x18b   : > { %859 = vst [vmem:[%s221_s27] sm:$0xff] %v857_v24  ;;  %v762_v27 = vadd.f32 %v761_v25, %v698_v9 }
 0x18d   : > { %v852_v29 = vadd.f32 %v848_v28, %v762_v27 }
 0x18f   : > { %v856_v30 = vadd.f32 %v1315_v21, %v852_v29 }
 0x191   : > { %v858_v31 = vmax.f32 %v856_v30, 0.0 }
 0x193   : > { %860 = vst [vmem:[%s221_s27 + $0x8] sm:$0xff] %v858_v31 }
 0x194   : > { %1433 = shalt.err (!%p1430_p10)
}
 0x195   : > { %s1482_s11 = smov 128   ;;  %s1483_s25 = smov 8  }
 0x196   : > { %1253 = dma.vmem_to_hbm [thread:$0]  (%p1573_p3), %s875_s28, 256, %s877_s4, %s862_s16, %s1482_s11, %s1482_s11, %s1483_s25  }
 0x197 PF: > { %s891_s5 = sand.u32 1, %s1464_s12   ;;  %p1718_p12 = scmp.ge.s32.totalorder %s1476_s15, 2 }
 0x198   : > { %s892_s18 = scalar_lea.sflag [#allocation6], %s891_s5 }
 0x199   : > { %p1267_p13 = pnand %p1718_p12, %p1539_p6 }
 0x19b   : > { %p1268_p0 = pneg %p1267_p13 }
 0x19d   : > { %1459 = dma.done.wait (%p1268_p0), %s892_s18, 256  }
 0x19e   : > { %1461 = vsyncadd (%p1268_p0), %s892_s18, 4294967040  ;;  %p17_p5 = scmp.ge.s32.totalorder %s1563_s6, 4   ;;  %s1719_s12 = smov %s1468_s13 }
 0x19f   : > { %s1720_s13 = smov %s1472_s14  ;;  %s1721_s14 = smov %s1579_s10 }
 0x1a0   : > { %s1722_s15 = smov %s1563_s6  ;;  %19 = sbr.rel (!%p17_p5) target bundleno = 6 (0x6), region = 90 }
 0x1a5   :  { %898 = vsyncpa [#allocation5], 1 }
 0x1a6   :  { %900 = vsyncpa [#allocation5 + $0x1], 1 }
 0x1a7   :  { %901 = vsyncpa [#allocation8], 1 }
 0x1a8   :  { %902 = vsyncpa [#allocation6], 1 }
 0x1a9   :  { %904 = vsyncpa [#allocation6 + $0x1], 1 }

</bundles_post_ra>
